<compile_context>
chip_gen: v7x
topology: tpu7x:2x2x1
jax: 0.10.0
libtpu: 0.0.40
codegen_flags: <defaults>
</compile_context>

<pallas_src>
import functools

import jax
import jax.numpy as jnp
from jax.experimental import pallas as pl
from jax.experimental.pallas import tpu as pltpu


# ----------------------------- Pallas kernels -----------------------------

def _mlp_kernel(xt_ref, w1t_ref, b1_ref, w2t_ref, b2_ref, zt_ref):
    """zT[:, tile] = W2^T @ relu(W1^T @ xT[:, tile] + b1) + b2  (lane-dense in N)."""
    h = jnp.dot(w1t_ref[...], xt_ref[...],
                preferred_element_type=jnp.float32) + b1_ref[...]
    h = jnp.maximum(h, 0.0)
    z = jnp.dot(w2t_ref[...], h,
                preferred_element_type=jnp.float32) + b2_ref[...]
    zt_ref[...] = z.astype(zt_ref.dtype)


def _newton_fused_kernel(points_ref,   # SMEM (K,)    f32
                         gamma_ref,    # SMEM (K+1,)  f32
                         zt_ref,       # VMEM (C, Np) f32   (constant index -> loaded once)
                         at_ref,       # VMEM (TL, Np) bf16 tile of A_hat^T
                         out_ref,      # out  (C, Np) f32   (constant index -> resident)
                         t_ref,        # VMEM scratch (C, Np) f32: current tmp
                         acc_ref,      # VMEM scratch (C, Np) f32: matmul accumulator
                         *, tl):
    k = pl.program_id(0)               # Newton step (sequential)
    l = pl.program_id(1)               # reduction tile over rows of A_hat^T (last axis)

    @pl.when((k == 0) & (l == 0))
    def _():
        z = zt_ref[...]
        t_ref[...] = z
        out_ref[...] = gamma_ref[0] * z        # folded `out = gamma[0] * z`

    @pl.when(l == 0)
    def _():
        acc_ref[...] = jnp.zeros_like(acc_ref)

    # acc[:, :] += t[:, l-tile] @ At[l-tile, :]  == ((A_hat @ tmp)^T) ; f32 MXU accumulate.
    l_off = pl.multiple_of(l * tl, tl)
    t_red = t_ref[:, pl.ds(l_off, tl)]
    acc_ref[...] += jnp.dot(t_red.astype(jnp.bfloat16), at_ref[...],
                            preferred_element_type=jnp.float32)

    @pl.when(l == pl.num_programs(1) - 1)
    def _():
        # tmp_new = A_hat@tmp - points[k]*tmp ; out += gamma[k+1]*tmp_new
        t_new = acc_ref[...] - points_ref[k] * t_ref[...]
        t_ref[...] = t_new
        out_ref[...] += gamma_ref[k + 1] * t_new


# ----------------------------- helpers -----------------------------

def _round_up(x, m):
    return -(-x // m) * m


def _largest_tile(n_pad, cap):
    t = min(cap, n_pad)
    t = max((t // 128) * 128, 128)
    while n_pad % t:
        t -= 128
    return t


def _physical_vmem_bytes():
    try:
        return int(pltpu.get_tpu_info().vmem_capacity_bytes)
    except Exception:
        return 64 * 1024 * 1024        # conservative fallback (v7x per-core VMEM)


def prepare_adjacency(a_hat):
    """Transpose + bf16-cast + lane-pad A_hat ONCE, outside the per-forward jit.

    (A_hat @ t)^T == t^T @ A_hat^T; for undirected graphs A_hat is symmetric and the
    transpose is a numerical no-op. Casting before padding halves the prep traffic.
    Padded rows/cols are exactly zero so padded garbage never leaks into valid columns.
    """
    n = a_hat.shape[0]
    n_pad = _round_up(n, 128)
    at = a_hat.T.astype(jnp.bfloat16)
    if n_pad != n:
        at = jnp.pad(at, ((0, n_pad - n), (0, n_pad - n)))
    return at


# ----------------------------- wrapper -----------------------------

def newton_forward(x, at_padded, w1, b1, w2, b2, gamma, points):
    """x: (N, Fin) f32, at_padded: (Npad, Npad) bf16 = padded A_hat^T (prepare_adjacency),
    w1: (Fin, H), b1: (H,), w2: (H, C), b2: (C,), gamma: (K+1,), points: (K,).
    Returns (N, C) f32."""
    n, fin = x.shape
    hid = w1.shape[1]
    c = w2.shape[1]
    k_order = points.shape[0]
    n_pad = at_padded.shape[0]
    assert at_padded.shape == (n_pad, n_pad) and n_pad % 128 == 0 and n_pad >= n

    # Transposed, lane-dense layouts (node axis -> 128-wide lanes).
    xt = jnp.zeros((fin, n_pad), jnp.float32).at[:, :n].set(x.T)
    w1t = w1.T                               # (H, Fin)
    b1c = b1.reshape(hid, 1).astype(jnp.float32)
    w2t = w2.T                               # (C, H)
    b2c = b2.reshape(c, 1).astype(jnp.float32)
    gamma_f = gamma.astype(jnp.float32)
    points_f = points.astype(jnp.float32)

    # Generation-aware VMEM budget: ~85% of physical (v5e/v6e: 128 MiB, v7x: 64 MiB).
    phys = _physical_vmem_bytes()
    vmem_limit = min(int(phys * 0.85), 112 * 1024 * 1024)

    # Fixed VMEM usage of the fused kernel (sublane-padded (C, Npad) f32 buffers):
    # z (x2 double-buffered) + out (x2) + t scratch + acc scratch + slack.
    c_eff = max(8, _round_up(c, 8))
    fixed = 6 * c_eff * n_pad * 4 + (2 << 20)
    budget_a = max(vmem_limit - fixed, 2 * 128 * n_pad * 2)

    # A_hat^T row-tile: largest multiple of 128 dividing n_pad whose double-buffered
    # bf16 (tl, n_pad) tile fits the budget.  tl == n_pad => A is VMEM-resident across
    # all K Newton steps (constant index map -> a single HBM pass over A).
    tl = n_pad
    while tl > 128 and not (n_pad % tl == 0 and 2 * tl * n_pad * 2 <= budget_a):
        tl -= 128
    while n_pad % tl:
        tl -= 128
    n_l = n_pad // tl
    a_resident = (tl == n_pad)

    # ---- MLP: z^T = lin2(relu(lin1(x)))^T, computed once, tiled over node columns ----
    tn_mlp = _largest_tile(n_pad, 1024)
    zt = pl.pallas_call(
        _mlp_kernel,
        out_shape=jax.ShapeDtypeStruct((c, n_pad), jnp.float32),
        grid=(n_pad // tn_mlp,),
        in_specs=[
            pl.BlockSpec((fin, tn_mlp), lambda j: (0, j)),
            pl.BlockSpec((hid, fin), lambda j: (0, 0)),
            pl.BlockSpec((hid, 1), lambda j: (0, 0)),
            pl.BlockSpec((c, hid), lambda j: (0, 0)),
            pl.BlockSpec((c, 1), lambda j: (0, 0)),
        ],
        out_specs=pl.BlockSpec((c, tn_mlp), lambda j: (0, j)),
        compiler_params=pltpu.CompilerParams(
            dimension_semantics=("parallel",),
            vmem_limit_bytes=vmem_limit),
        cost_estimate=pl.CostEstimate(
            flops=2 * n_pad * (fin * hid + hid * c),
            transcendentals=0,
            bytes_accessed=4 * (n_pad * fin + n_pad * c + fin * hid + hid * c + hid + c)),
    )(xt, w1t, b1c, w2t, b2c)

    if k_order == 0:                       # degenerate Newton_prop order
        return (gamma_f[0] * zt)[:, :n].T

    # ---- fused Newton propagation: all K steps in ONE pallas_call ----
    a_passes = 1 if a_resident else k_order
    out_t = pl.pallas_call(
        functools.partial(_newton_fused_kernel, tl=tl),
        out_shape=jax.ShapeDtypeStruct((c, n_pad), jnp.float32),
        grid=(k_order, n_l),                              # k outermost, reduction last
        in_specs=[
            pl.BlockSpec(memory_space=pltpu.MemorySpace.SMEM),   # points (K,)
            pl.BlockSpec(memory_space=pltpu.MemorySpace.SMEM),   # gamma (K+1,)
            pl.BlockSpec((c, n_pad), lambda k, l: (0, 0)),       # z^T, loaded once
            pl.BlockSpec((tl, n_pad), lambda k, l: (l, 0)),      # A_hat^T (bf16 full rows)
        ],
        out_specs=pl.BlockSpec((c, n_pad), lambda k, l: (0, 0)), # out^T, VMEM-resident
        scratch_shapes=[pltpu.VMEM((c, n_pad), jnp.float32),     # tmp (persists over grid)
                        pltpu.VMEM((c, n_pad), jnp.float32)],    # matmul accumulator
        compiler_params=pltpu.CompilerParams(
            dimension_semantics=("arbitrary", "arbitrary"),
            vmem_limit_bytes=vmem_limit),
        cost_estimate=pl.CostEstimate(
            flops=k_order * (2 * n_pad * n_pad * c + 4 * n_pad * c),
            transcendentals=0,
            bytes_accessed=a_passes * n_pad * n_pad * 2 + 2 * 4 * c * n_pad),
    )(points_f, gamma_f, zt, at_padded)

    return out_t[:, :n].T                  # back to (N, out_channels)


# ----------------------------- plain-JAX glue -----------------------------

def gcn_norm_dense(edge_index, num_nodes):
    """Dense symmetric-normalized adjacency with self-loops (gcn_norm semantics)."""
    src, dst = edge_index
    adj = jnp.zeros((num_nodes, num_nodes), jnp.float32)
    adj = adj.at[src, dst].set(1.0)
    diag = jnp.arange(num_nodes)
    adj = adj.at[diag, diag].set(1.0)          # add remaining self-loops (never doubles)
    deg = adj.sum(axis=1)
    d_inv_sqrt = jnp.where(deg > 0, 1.0 / jnp.sqrt(deg), 0.0)
    return d_inv_sqrt[:, None] * adj * d_inv_sqrt[None, :]


def newton_reference(x, a_hat, w1, b1, w2, b2, gamma, points):
    """Pure-JAX reference of the module's forward (eval mode)."""
    h = jnp.maximum(x @ w1 + b1[None, :], 0.0)
    z = h @ w2 + b2[None, :]
    out = gamma[0] * z
    tmp = z
    for k in range(points.shape[0]):
        tmp = a_hat @ tmp - points[k] * tmp
        out = out + gamma[k + 1] * tmp
    return out


# ----------------------------- driver -----------------------------

if __name__ == "__main__":
    N = 256             # nodes (small, exercises the lane-padded grid)
    IN_CH = 8           # in_channels
    HID = 32            # hidden_channels
    OUT_CH = 4          # out_channels
    K = 3               # Newton_prop order (len(points))

    key = jax.random.PRNGKey(0)
    kx, k1, k2, kg = jax.random.split(key, 4)

    x = jax.random.normal(kx, (N, IN_CH), jnp.float32)
    w1 = jax.random.normal(k1, (IN_CH, HID), jnp.float32) * (1.0 / jnp.sqrt(IN_CH))
    b1 = jnp.zeros((HID,), jnp.float32)
    w2 = jax.random.normal(k2, (HID, OUT_CH), jnp.float32) * (1.0 / jnp.sqrt(HID))
    b2 = jnp.zeros((OUT_CH,), jnp.float32)

    points = jnp.linspace(0.0, 2.0, K).astype(jnp.float32)
    gamma = jax.random.normal(kg, (K + 1,), jnp.float32) * 0.1 + 1.0

    # Simple deterministic graph: ring of N nodes (both directions).
    src = jnp.arange(N, dtype=jnp.int32)
    dst = (src + 1) % N
    edge_index = jnp.stack([jnp.concatenate([src, dst]),
                            jnp.concatenate([dst, src])], axis=0)
    a_hat = gcn_norm_dense(edge_index, N)

    # A preprocessing (transpose + bf16 + pad) hoisted outside the per-forward jit:
    # constant across forward calls for a fixed graph.
    at_prepared = jax.block_until_ready(prepare_adjacency(a_hat))

    # NOTE: dropout (p=self.dropout / self.dprate) is identity in eval mode; not emitted.
    fwd = jax.jit(newton_forward)
    out = jax.block_until_ready(fwd(x, at_prepared, w1, b1, w2, b2, gamma, points))

    ref = newton_reference(x, a_hat, w1, b1, w2, b2, gamma, points)
    err = float(jnp.max(jnp.abs(out - ref)))
    scale = float(jnp.max(jnp.abs(ref))) + 1.0

    assert out.shape == (N, OUT_CH)
    assert bool(jnp.all(jnp.isfinite(out)))
    # bf16-streamed A_hat + f32 accumulation: allow a generous relative tolerance.
    assert err <= 5e-2 * scale, f"max abs err {err} vs scale {scale}"
    print("KERNEL_OK")
</pallas_src>

<mosaic_0001>
module attributes {stable_mosaic.version = 11 : i64} {
  func.func @_mlp_kernel(%arg0: i32, %arg1: memref<8x256xf32, #tpu.memory_space<vmem>>, %arg2: memref<32x8xf32, #tpu.memory_space<vmem>>, %arg3: memref<32x1xf32, #tpu.memory_space<vmem>>, %arg4: memref<4x32xf32, #tpu.memory_space<vmem>>, %arg5: memref<4x1xf32, #tpu.memory_space<vmem>>, %arg6: memref<4x256xf32, #tpu.memory_space<vmem>>) attributes {dimension_semantics = [#tpu.dimension_semantics<parallel>], iteration_bounds = array<i64: 1>, scalar_prefetch = 0 : i64, scratch_operands = 0 : i64, tpu.core_type = #tpu.core_type<tc>, window_params = [{transform_indices = @transform_0, window_bounds = array<i64: 8, 256>}, {pipeline_mode = #tpu.pipeline_mode<synchronous>, transform_indices = @transform_1, window_bounds = array<i64: 32, 8>}, {pipeline_mode = #tpu.pipeline_mode<synchronous>, transform_indices = @transform_2, window_bounds = array<i64: 32, 1>}, {pipeline_mode = #tpu.pipeline_mode<synchronous>, transform_indices = @transform_3, window_bounds = array<i64: 4, 32>}, {pipeline_mode = #tpu.pipeline_mode<synchronous>, transform_indices = @transform_4, window_bounds = array<i64: 4, 1>}, {transform_indices = @transform_5, window_bounds = array<i64: 4, 256>}]} {
    %c0 = arith.constant 0 : index
    %c0_0 = arith.constant 0 : index
    %0 = vector.load %arg2[%c0, %c0_0] : memref<32x8xf32, #tpu.memory_space<vmem>>, vector<32x8xf32>
    %c0_1 = arith.constant 0 : index
    %c0_2 = arith.constant 0 : index
    %1 = vector.load %arg1[%c0_1, %c0_2] : memref<8x256xf32, #tpu.memory_space<vmem>>, vector<8x256xf32>
    %cst = arith.constant dense<0.000000e+00> : vector<32x256xf32>
    %2 = tpu.matmul %0, %1, %cst {dimension_numbers = #tpu.dot_dimension_numbers<[1], [0], [0], [1], [0, 0, 1, 1], [], []>} : vector<32x8xf32>, vector<8x256xf32>, vector<32x256xf32> -> vector<32x256xf32>
    %c0_3 = arith.constant 0 : index
    %c0_4 = arith.constant 0 : index
    %3 = vector.load %arg3[%c0_3, %c0_4] : memref<32x1xf32, #tpu.memory_space<vmem>>, vector<32x1xf32>
    %4 = vector.broadcast %3 : vector<32x1xf32> to vector<32x256xf32>
    %5 = arith.addf %2, %4 : vector<32x256xf32>
    %cst_5 = arith.constant 0.000000e+00 : f32
    %6 = vector.broadcast %cst_5 : f32 to vector<32x256xf32>
    %7 = arith.maximumf %5, %6 : vector<32x256xf32>
    %c0_6 = arith.constant 0 : index
    %c0_7 = arith.constant 0 : index
    %8 = vector.load %arg4[%c0_6, %c0_7] : memref<4x32xf32, #tpu.memory_space<vmem>>, vector<4x32xf32>
    %cst_8 = arith.constant dense<0.000000e+00> : vector<4x256xf32>
    %9 = tpu.matmul %8, %7, %cst_8 {dimension_numbers = #tpu.dot_dimension_numbers<[1], [0], [0], [1], [0, 0, 1, 1], [], []>} : vector<4x32xf32>, vector<32x256xf32>, vector<4x256xf32> -> vector<4x256xf32>
    %c0_9 = arith.constant 0 : index
    %c0_10 = arith.constant 0 : index
    %10 = vector.load %arg5[%c0_9, %c0_10] : memref<4x1xf32, #tpu.memory_space<vmem>>, vector<4x1xf32>
    %11 = vector.broadcast %10 : vector<4x1xf32> to vector<4x256xf32>
    %12 = arith.addf %9, %11 : vector<4x256xf32>
    %c0_11 = arith.constant 0 : index
    %c0_12 = arith.constant 0 : index
    %13 = vector.load %arg6[%c0_11, %c0_12] : memref<4x256xf32, #tpu.memory_space<vmem>>, vector<4x256xf32>
    tpu.vector_store %arg6[%c0_11, %c0_12], %12 {strides = array<i32>} : memref<4x256xf32, #tpu.memory_space<vmem>>, vector<4x256xf32>,
    return
  }
  func.func @transform_0(%arg0: i32) -> (i32, i32) {
    %c0_i32 = arith.constant 0 : i32
    %c0_i32_0 = arith.constant 0 : i32
    return %c0_i32, %arg0 : i32, i32
  }
  func.func @transform_1(%arg0: i32) -> (i32, i32) {
    %c0_i32 = arith.constant 0 : i32
    %c0_i32_0 = arith.constant 0 : i32
    %c0_i32_1 = arith.constant 0 : i32
    return %c0_i32, %c0_i32_0 : i32, i32
  }
  func.func @transform_2(%arg0: i32) -> (i32, i32) {
    %c0_i32 = arith.constant 0 : i32
    %c0_i32_0 = arith.constant 0 : i32
    %c0_i32_1 = arith.constant 0 : i32
    return %c0_i32, %c0_i32_0 : i32, i32
  }
  func.func @transform_3(%arg0: i32) -> (i32, i32) {
    %c0_i32 = arith.constant 0 : i32
    %c0_i32_0 = arith.constant 0 : i32
    %c0_i32_1 = arith.constant 0 : i32
    return %c0_i32, %c0_i32_0 : i32, i32
  }
  func.func @transform_4(%arg0: i32) -> (i32, i32) {
    %c0_i32 = arith.constant 0 : i32
    %c0_i32_0 = arith.constant 0 : i32
    %c0_i32_1 = arith.constant 0 : i32
    return %c0_i32, %c0_i32_0 : i32, i32
  }
  func.func @transform_5(%arg0: i32) -> (i32, i32) {
    %c0_i32 = arith.constant 0 : i32
    %c0_i32_0 = arith.constant 0 : i32
    return %c0_i32, %arg0 : i32, i32
  }
}

module attributes {stable_mosaic.version = 11 : i64} {
  func.func @_newton_fused_kernel(%arg0: i32, %arg1: i32, %arg2: memref<3xf32, #tpu.memory_space<smem>>, %arg3: memref<4xf32, #tpu.memory_space<smem>>, %arg4: memref<4x256xf32, #tpu.memory_space<vmem>>, %arg5: memref<256x256xbf16, #tpu.memory_space<vmem>>, %arg6: memref<4x256xf32, #tpu.memory_space<vmem>>, %arg7: memref<4x256xf32, #tpu.memory_space<vmem>>, %arg8: memref<4x256xf32, #tpu.memory_space<vmem>>) attributes {dimension_semantics = [#tpu.dimension_semantics<arbitrary>, #tpu.dimension_semantics<arbitrary>], iteration_bounds = array<i64: 3, 1>, scalar_prefetch = 0 : i64, scratch_operands = 2 : i64, tpu.core_type = #tpu.core_type<tc>, window_params = [{transform_indices = @transform_0, window_bounds = array<i64: 3>}, {transform_indices = @transform_1, window_bounds = array<i64: 4>}, {pipeline_mode = #tpu.pipeline_mode<synchronous>, transform_indices = @transform_2, window_bounds = array<i64: 4, 256>}, {transform_indices = @transform_3, window_bounds = array<i64: 256, 256>}, {pipeline_mode = #tpu.pipeline_mode<synchronous>, transform_indices = @transform_4, window_bounds = array<i64: 4, 256>}]} {
    %c0_i32 = arith.constant 0 : i32
    %0 = arith.cmpi eq, %arg0, %c0_i32 : i32
    %c0_i32_0 = arith.constant 0 : i32
    %1 = arith.cmpi eq, %arg1, %c0_i32_0 : i32
    %2 = arith.andi %0, %1 : i1
    %3 = arith.extui %2 : i1 to i32
    %c0_i32_1 = arith.constant 0 : i32
    %4 = arith.cmpi ne, %3, %c0_i32_1 : i32
    scf.if %4 {
      %c0_12 = arith.constant 0 : index
      %c0_13 = arith.constant 0 : index
      %21 = vector.load %arg4[%c0_12, %c0_13] : memref<4x256xf32, #tpu.memory_space<vmem>>, vector<4x256xf32>
      %c0_14 = arith.constant 0 : index
      %c0_15 = arith.constant 0 : index
      %22 = vector.load %arg7[%c0_14, %c0_15] : memref<4x256xf32, #tpu.memory_space<vmem>>, vector<4x256xf32>
      tpu.vector_store %arg7[%c0_14, %c0_15], %21 {strides = array<i32>} : memref<4x256xf32, #tpu.memory_space<vmem>>, vector<4x256xf32>,
      %c0_16 = arith.constant 0 : index
      %23 = memref.load %arg3[%c0_16] : memref<4xf32, #tpu.memory_space<smem>>
      %24 = vector.broadcast %23 : f32 to vector<4x256xf32>
      %25 = arith.mulf %24, %21 : vector<4x256xf32>
      %c0_17 = arith.constant 0 : index
      %c0_18 = arith.constant 0 : index
      %26 = vector.load %arg6[%c0_17, %c0_18] : memref<4x256xf32, #tpu.memory_space<vmem>>, vector<4x256xf32>
      tpu.vector_store %arg6[%c0_17, %c0_18], %25 {strides = array<i32>} : memref<4x256xf32, #tpu.memory_space<vmem>>, vector<4x256xf32>,
    } else {
    }
    %c0_i32_2 = arith.constant 0 : i32
    %5 = arith.cmpi eq, %arg1, %c0_i32_2 : i32
    %6 = arith.extui %5 : i1 to i32
    %c0_i32_3 = arith.constant 0 : i32
    %7 = arith.cmpi ne, %6, %c0_i32_3 : i32
    scf.if %7 {
      %cst_12 = arith.constant 0.000000e+00 : f32
      %21 = vector.broadcast %cst_12 : f32 to vector<4x256xf32>
      %c0_13 = arith.constant 0 : index
      %c0_14 = arith.constant 0 : index
      %22 = vector.load %arg8[%c0_13, %c0_14] : memref<4x256xf32, #tpu.memory_space<vmem>>, vector<4x256xf32>
      tpu.vector_store %arg8[%c0_13, %c0_14], %21 {strides = array<i32>} : memref<4x256xf32, #tpu.memory_space<vmem>>, vector<4x256xf32>,
    } else {
    }
    %c256_i32 = arith.constant 256 : i32
    %8 = arith.muli %arg1, %c256_i32 : i32
    %9 = tpu.assume_multiple %8, 256 : i32
    %c0 = arith.constant 0 : index
    %10 = arith.index_cast %9 : i32 to index
    %11 = vector.load %arg7[%c0, %10] : memref<4x256xf32, #tpu.memory_space<vmem>>, vector<4x256xf32>
    %c0_4 = arith.constant 0 : index
    %c0_5 = arith.constant 0 : index
    %12 = vector.load %arg8[%c0_4, %c0_5] : memref<4x256xf32, #tpu.memory_space<vmem>>, vector<4x256xf32>
    %13 = arith.truncf %11 : vector<4x256xf32> to vector<4x256xbf16>
    %c0_6 = arith.constant 0 : index
    %c0_7 = arith.constant 0 : index
    %14 = vector.load %arg5[%c0_6, %c0_7] : memref<256x256xbf16, #tpu.memory_space<vmem>>, vector<256x256xbf16>
    %cst = arith.constant dense<0.000000e+00> : vector<4x256xf32>
    %15 = tpu.matmul %13, %14, %cst {dimension_numbers = #tpu.dot_dimension_numbers<[1], [0], [0], [1], [0, 0, 1, 1], [], []>} : vector<4x256xbf16>, vector<256x256xbf16>, vector<4x256xf32> -> vector<4x256xf32>
    %16 = arith.addf %12, %15 : vector<4x256xf32>
    %c0_8 = arith.constant 0 : index
    %c0_9 = arith.constant 0 : index
    %17 = vector.load %arg8[%c0_8, %c0_9] : memref<4x256xf32, #tpu.memory_space<vmem>>, vector<4x256xf32>
    tpu.vector_store %arg8[%c0_8, %c0_9], %16 {strides = array<i32>} : memref<4x256xf32, #tpu.memory_space<vmem>>, vector<4x256xf32>,
    %c0_i32_10 = arith.constant 0 : i32
    %18 = arith.cmpi eq, %arg1, %c0_i32_10 : i32
    %19 = arith.extui %18 : i1 to i32
    %c0_i32_11 = arith.constant 0 : i32
    %20 = arith.cmpi ne, %19, %c0_i32_11 : i32
    scf.if %20 {
      %c0_12 = arith.constant 0 : index
      %c0_13 = arith.constant 0 : index
      %21 = vector.load %arg8[%c0_12, %c0_13] : memref<4x256xf32, #tpu.memory_space<vmem>>, vector<4x256xf32>
      %22 = arith.index_cast %arg0 : i32 to index
      %23 = memref.load %arg2[%22] : memref<3xf32, #tpu.memory_space<smem>>
      %c0_14 = arith.constant 0 : index
      %c0_15 = arith.constant 0 : index
      %24 = vector.load %arg7[%c0_14, %c0_15] : memref<4x256xf32, #tpu.memory_space<vmem>>, vector<4x256xf32>
      %25 = vector.broadcast %23 : f32 to vector<4x256xf32>
      %26 = arith.mulf %25, %24 : vector<4x256xf32>
      %27 = arith.subf %21, %26 : vector<4x256xf32>
      %c0_16 = arith.constant 0 : index
      %c0_17 = arith.constant 0 : index
      %28 = vector.load %arg7[%c0_16, %c0_17] : memref<4x256xf32, #tpu.memory_space<vmem>>, vector<4x256xf32>
      tpu.vector_store %arg7[%c0_16, %c0_17], %27 {strides = array<i32>} : memref<4x256xf32, #tpu.memory_space<vmem>>, vector<4x256xf32>,
      %c0_18 = arith.constant 0 : index
      %c0_19 = arith.constant 0 : index
      %29 = vector.load %arg6[%c0_18, %c0_19] : memref<4x256xf32, #tpu.memory_space<vmem>>, vector<4x256xf32>
      %c1_i32 = arith.constant 1 : i32
      %30 = arith.addi %arg0, %c1_i32 : i32
      %31 = arith.index_cast %30 : i32 to index
      %32 = memref.load %arg3[%31] : memref<4xf32, #tpu.memory_space<smem>>
      %33 = vector.broadcast %32 : f32 to vector<4x256xf32>
      %34 = arith.mulf %33, %27 : vector<4x256xf32>
      %35 = arith.addf %29, %34 : vector<4x256xf32>
      %c0_20 = arith.constant 0 : index
      %c0_21 = arith.constant 0 : index
      %36 = vector.load %arg6[%c0_20, %c0_21] : memref<4x256xf32, #tpu.memory_space<vmem>>, vector<4x256xf32>
      tpu.vector_store %arg6[%c0_20, %c0_21], %35 {strides = array<i32>} : memref<4x256xf32, #tpu.memory_space<vmem>>, vector<4x256xf32>,
    } else {
    }
    return
  }
  func.func @transform_0(%arg0: i32, %arg1: i32) -> i32 {
    %c0_i32 = arith.constant 0 : i32
    %c0_i32_0 = arith.constant 0 : i32
    return %c0_i32 : i32
  }
  func.func @transform_1(%arg0: i32, %arg1: i32) -> i32 {
    %c0_i32 = arith.constant 0 : i32
    %c0_i32_0 = arith.constant 0 : i32
    return %c0_i32 : i32
  }
  func.func @transform_2(%arg0: i32, %arg1: i32) -> (i32, i32) {
    %c0_i32 = arith.constant 0 : i32
    %c0_i32_0 = arith.constant 0 : i32
    %c0_i32_1 = arith.constant 0 : i32
    return %c0_i32, %c0_i32_0 : i32, i32
  }
  func.func @transform_3(%arg0: i32, %arg1: i32) -> (i32, i32) {
    %c0_i32 = arith.constant 0 : i32
    %c0_i32_0 = arith.constant 0 : i32
    return %arg1, %c0_i32 : i32, i32
  }
  func.func @transform_4(%arg0: i32, %arg1: i32) -> (i32, i32) {
    %c0_i32 = arith.constant 0 : i32
    %c0_i32_0 = arith.constant 0 : i32
    %c0_i32_1 = arith.constant 0 : i32
    return %c0_i32, %c0_i32_0 : i32, i32
  }
}

</mosaic_0001>

<bundles_post_ra>
// kernel: newton_forward.2
= control target key start
LH: loop header
LB: loop body
LE: loop exit
PB: predicated region body
PF: predicated region fallthrough
CT: control target
= control target key end

     0   :  { %v268_v2 = vmov 0.0   ;;  %vm50_vm0 = vcmask 64512   ;;  %v269_v4 = vmov 0   ;;  %vm167_vm1 = vcmask 261120   ;;  %s343_s0 = inlined_call_operand.vmem [shape: f32[8,256], index: 0, kind: input, shape index: {}]   ;;  %s344_s1 = inlined_call_operand.vmem [shape: f32[32,8], index: 1, kind: input, shape index: {}]   ;;  %s345_s2 = inlined_call_operand.vmem [shape: f32[32,1], index: 2, kind: input, shape index: {}]   ;;  %s346_s4 = inlined_call_operand.vmem [shape: f32[4,1], index: 4, kind: input, shape index: {}]   ;;  %s347_s3 = inlined_call_operand.vmem [shape: f32[4,32], index: 3, kind: input, shape index: {}]   ;;  %s348_s5 = inlined_call_operand.vmem [shape: f32[4,256], index: 5, kind: output, shape index: {}]  }
   0x1   :  { %v25_v0 = vld [vmem:[%s343_s0 + $0x8] sm:$0xff]  ;;  %v24_v1 = vld [vmem:[%s343_s0] sm:$0xff]  ;;  %127 = vmatprep.mubr.f32.mxu0 %v268_v2  ;;  %266 = vset.pattern.permute.xlu0 %v269_v4  ;;  %v28_v6 = vld [vmem:[%s345_s2 + $0x10] sm:$0xff] }
   0x2   :  { %v20_v3 = vld [vmem:[%s344_s1] sm:$0xff]  ;;  %63 = vmatprep.subr.mxu0 %v25_v0  ;;  %267 = vset.pattern.permute.xlu1 %v269_v4  ;;  %v21_v7 = vld [vmem:[%s344_s1 + $0x8] sm:$0xff]  ;;  %v29_v9 = vld [vmem:[%s345_s2 + $0x18] sm:$0xff] }
   0x3   :  { %64 = vmatpush1.msra.mxu0 %v24_v1  ;;  %v26_v5 = vld [vmem:[%s345_s2] sm:$0xff]  ;;  %235 = vmatprep.mubr.f32.mxu1 %v268_v2  ;;  %v27_v8 = vld [vmem:[%s345_s2 + $0x8] sm:$0xff]  ;;  %v22_v10 = vld [vmem:[%s344_s1 + $0x10] sm:$0xff] }
   0x4   :  { %251 = vmatmul.mubr.msk.f32.vlgmr.msra.gmra.mrb[0].mxu0 %vm50_vm0, %v20_v3  ;;  %32 = vperm.xlu0 %266, %v26_v5   ;;  %v161_v11 = vld [vmem:[%s346_s4] sm:$0xf]  ;;  %v23_v12 = vld [vmem:[%s344_s1 + $0x18] sm:$0xff] }
   0x5   :  { %133 = vmatprep.mubr.f32.mxu0 %v268_v2  ;;  %42 = vperm.xlu1 %267, %v28_v6   ;;  %v160_v45 = vld [vmem:[%s347_s3] sm:$0xf] }
   0x8   :  { %252 = vmatmul.mubr.msk.f32.gmra.mrb[2].mxu0 %vm50_vm0, %v21_v7  ;;  %37 = vperm.xlu0 %266, %v27_v8  }
   0x9   :  { %139 = vmatprep.mubr.f32.mxu0 %v268_v2  ;;  %47 = vperm.xlu1 %267, %v29_v9  }
   0xc   :  { %253 = vmatmul.mubr.msk.f32.gmra.mrb[4].mxu0 %vm50_vm0, %v22_v10  ;;  %164 = vperm.xlu0 %266, %v161_v11  }
   0xd   :  { %145 = vmatprep.mubr.f32.mxu0 %v268_v2 }
  0x10   :  { %254 = vmatmul.mubr.msk.f32.gmra.mrb[6].mxu0 %vm50_vm0, %v23_v12 }
  0x83   :  { %v33_v13 = vpop.permute.xlu0 %32 }
  0x84   :  { %v43_v22 = vpop.permute.xlu1 %42 }
  0x87   :  { %v38_v17 = vpop.permute.xlu0 %37 }
  0x88   :  { %v48_v33 = vpop.permute.xlu1 %47 }
  0x8b   :  { %v165_v46 = vpop.permute.xlu0 %164 }
  0xd7   :  { %v129_v14 = vpop.f32.mrb[0].mxu0 }
  0xd8   :  { %v131_v15 = vpop.f32.mrb[1].mxu0  ;;  %v130_v16 = vadd.f32 %v129_v14, %v33_v13 }
  0xd9   :  { %v132_v18 = vadd.f32 %v131_v15, %v33_v13 }
  0xda   :  { %v152_v24 = vmax.f32 %v130_v16, 0.0 }
  0xdb   :  { %v135_v19 = vpop.f32.mrb[2].mxu0  ;;  %v153_v26 = vmax.f32 %v132_v18, 0.0 }
  0xdc   :  { %v136_v20 = vadd.f32 %v135_v19, %v38_v17  ;;  %v137_v21 = vpop.f32.mrb[3].mxu0 }
  0xdd   :  { %v138_v23 = vadd.f32 %v137_v21, %v38_v17 }
  0xde   :  { %v154_v25 = vmax.f32 %v136_v20, 0.0 }
  0xdf   :  { %v155_v27 = vmax.f32 %v138_v23, 0.0  ;;  %v141_v28 = vpop.f32.mrb[4].mxu0 }
  0xe0   :  { %v143_v29 = vpop.f32.mrb[5].mxu0  ;;  %v258_v30 = vpack.c.bf16 %v154_v25, %v152_v24  ;;  %v142_v32 = vadd.f32 %v141_v28, %v43_v22 }
  0xe1   :  { %v256_v31 = vpack.c.bf16 %v155_v27, %v153_v26  ;;  %v144_v34 = vadd.f32 %v143_v29, %v43_v22 }
  0xe2   :  { %v156_v39 = vmax.f32 %v142_v32, 0.0 }
  0xe3   :  { %v147_v35 = vpop.f32.mrb[6].mxu0  ;;  %257 = vmatprep.subr.bf16.mxu1 %v256_v31  ;;  %v157_v41 = vmax.f32 %v144_v34, 0.0 }
  0xe4   :  { %v148_v36 = vadd.f32 %v147_v35, %v48_v33  ;;  %v149_v37 = vpop.f32.mrb[7].mxu0  ;;  %259 = vmatpush1.bf16.msra.mxu1 %v258_v30 }
  0xe5   :  { %v150_v38 = vadd.f32 %v149_v37, %v48_v33 }
  0xe6   :  { %v158_v40 = vmax.f32 %v148_v36, 0.0 }
  0xe7   :  { %v159_v42 = vmax.f32 %v150_v38, 0.0 }
  0xe8   :  { %v262_v43 = vpack.c.bf16 %v158_v40, %v156_v39 }
  0xe9   :  { %v260_v44 = vpack.c.bf16 %v159_v42, %v157_v41 }
  0xeb   :  { %261 = vmatprep.subr.bf16.mxu1 %v260_v44 }
  0xec   :  { %263 = vmatpush1.bf16.msra.mxu1 %v262_v43 }
  0xef   :  { %255 = vmatmul.mubr.msk.f32.vlgmr.msra.gmra.mrb[0].mxu1 %vm167_vm1, %v160_v45 }
 0x1c2   :  { %v237_v47 = vpop.f32.mrb[0].mxu1 }
 0x1c3   :  { %v238_v48 = vadd.f32 %v237_v47, %v165_v46  ;;  %v239_v49 = vpop.f32.mrb[1].mxu1 }
 0x1c4   :  { %v240_v50 = vadd.f32 %v239_v49, %v165_v46 }
 0x1c6   :  { %v244_v51 = vcombine.low %v238_v48, %v240_v50 }
 0x1c8   :  { %246 = vst [vmem:[%s348_s5] sm:$0xff] %v244_v51 }

// kernel: newton_forward.3
= control target key start
LH: loop header
LB: loop body
LE: loop exit
PB: predicated region body
PF: predicated region fallthrough
CT: control target
= control target key end

     0   :  { %9 = vsyncpa [#allocation7], 0  ;;  %s1042_s0 = inlined_call_operand.vmem [shape: f32[3], index: 0, kind: input, shape index: {}]   ;;  %s1043_s1 = inlined_call_operand.vmem [shape: f32[4], index: 1, kind: input, shape index: {}]   ;;  %s1044_s2 = inlined_call_operand.vmem [shape: f32[4,256], index: 2, kind: input, shape index: {}]   ;;  %s1045_s3 = inlined_call_operand.hbm [shape: bf16[256,256], index: 3, kind: input, shape index: {}]   ;;  %s1046_s4 = inlined_call_operand.hbm [shape: f32[4,256], index: 4, kind: output, shape index: {}]  }
   0x1   :  { %10 = vsyncpa [#allocation9], 0 }
   0x2   :  { %11 = vsyncpa [#allocation5], 0 }
   0x3   :  { %12 = vsyncpa [#allocation6], 0  ;;  %s908_s15 = smov 0   ;;  %s910_s16 = smov 0  }
   0x4   :  { %s912_s17 = smov 0  }
   0x5 LB: > { %s593_s18 = sadd.s32 4294967295, %s875_s17   ;;  %s30_s19 = sadd.s32 1, %s871_s16  ;;  %s875_s17 = sphi %s912_s17, %s18_s17   ;;  %s871_s16 = sphi %s910_s16, %s1057_s16   ;;  %s867_s15 = sphi %s908_s15, %s1056_s15  }
   0x6   : > { %p32_p0 = scmp.ge.s32.totalorder %s30_s19, 3  ;;  %p594_p1 = scmp.ge.s32.totalorder %s875_s17, 1 }
   0x7   : > { %p145_p2 = scmp.lt.s32.totalorder %s875_s17, 4  ;;  %p935_p4 = scmp.eq.s32.totalorder %s593_s18, 0 }
   0x8   : > { %s1059_s19 = smov (%p32_p0, %s30_s19), 0  ;;  %s158_s24 = sshll.u32 %s1042_s0, 4  ;;  %s159_s24 = int_to_ptr.vmem [resolvable:$true] %s158_s24 }
   0x9   : > { %p929_p3 = pnand %p594_p1, %p145_p2  ;;  %s169_s27 = sshll.u32 %s1043_s1, 4  ;;  %s170_s27 = int_to_ptr.vmem [resolvable:$true] %s169_s27 }
   0xa   : > { %s1051_s21 = scalar_select %p935_p4, 1, 0 }
   0xb   : > { %s1050_s20 = scalar_select %p929_p3, 1, 0 }
   0xc   : > { %p656_p5 = pneg %p929_p3  ;;  %s877_s29 = smov [#allocation10]  }
   0xd   : > { %s186_s30 = sshll.u32 %s877_s29, 4  ;;  %s753_s5 = scalar_lea.vmem %s159_s24, 16  ;;  %s187_s30 = int_to_ptr.vmem [resolvable:$true] %s186_s30 }
   0xe   : > { %p949_p6 = pnand %p935_p4, %p656_p5  ;;  %p754_p7 = scmp.ne.s32.totalorder %s159_s24, %s753_s5 }
   0xf   : > { %p761_p11 = scmp.lt.s32.totalorder %s159_s24, %s159_s24  ;;  %p762_p12 = scmp.lt.s32.totalorder %s753_s5, %s753_s5 }
  0x10   : > { %p755_p8 = pneg %p949_p6 }
  0x11   : > { %p763_p13 = por %p762_p12, %p761_p11 }
  0x12   : > { %p756_p9 = pnand %p755_p8, %p754_p7 }
  0x14   : > { %p757_p10 = pneg %p756_p9 }
  0x16   : > { %p764_p0 = pnand %p763_p13, %p757_p10 }
  0x18   : > { %767 = shalt.err (!%p764_p0)
}
  0x19   : > { %s878_s6 = smov [#allocation4]   ;;  %s768_s7 = scalar_lea.vmem %s170_s27, 16 }
  0x1a   : > { %659 = dma.vmem_to_smem (!%p949_p6), %s159_s24, 16, %s878_s6, [#allocation7]  }
  0x1b   : > { %p769_p1 = scmp.ne.s32.totalorder %s170_s27, %s768_s7  ;;  %p776_p4 = scmp.lt.s32.totalorder %s170_s27, %s170_s27 }
  0x1c   : > { %p777_p3 = scmp.lt.s32.totalorder %s768_s7, %s768_s7 }
  0x1d   : > { %p771_p2 = pnand %p769_p1, %p755_p8 }
  0x1e   : > { %p778_p7 = por %p777_p3, %p776_p4 }
  0x1f   : > { %p772_p5 = pneg %p771_p2 }
  0x21   : > { %p779_p9 = pnand %p778_p7, %p772_p5 }
  0x23   : > { %782 = shalt.err (!%p779_p9)
}
  0x24   : > { %s879_s8 = smov [#allocation8]   ;;  %s783_s11 = scalar_lea.hbm %s1045_s3, 4096 }
  0x25   : > { %662 = dma.vmem_to_smem (!%p949_p6), %s170_s27, 16, %s879_s8, [#allocation9]  }
  0x26   : > { %p784_p10 = scmp.ne.s32.totalorder %s1045_s3, %s783_s11  ;;  %p790_p4 = scmp.lt.u32.totalorder %s783_s11, %s1045_s3 }
  0x28   : > { %p786_p11 = pnand %p784_p10, %p755_p8 }
  0x2a   : > { %p787_p3 = pneg %p786_p11 }
  0x2c   : > { %p792_p12 = pnand %p790_p4, %p787_p3 }
  0x2e   : > { %795 = shalt.err (!%p792_p12)
}
  0x2f   : > { %s796_s23 = scalar_lea.vmem %s187_s30, 4096  ;;  %p804_p2 = scmp.lt.s32.totalorder %s187_s30, %s187_s30 }
  0x30   : > { %p797_p13 = scmp.ne.s32.totalorder %s187_s30, %s796_s23  ;;  %p805_p5 = scmp.lt.s32.totalorder %s796_s23, %s796_s23 }
  0x32   : > { %p799_p0 = pnand %p797_p13, %p755_p8  ;;  %p806_p7 = por %p805_p5, %p804_p2 }
  0x34   : > { %p800_p1 = pneg %p799_p0 }
  0x36   : > { %p807_p9 = pnand %p806_p7, %p800_p1 }
  0x38   : > { %810 = shalt.err (!%p807_p9)
}
  0x39   : > { %s880_s24 = smov 128   ;;  %s881_s25 = smov 8  }
  0x3a   : > { %665 = dma.hbm_to_vmem [thread:$0]  (!%p949_p6), %s1045_s3, 4096, %s187_s30, [#allocation5], %s880_s24, %s880_s24, %s881_s25  }
  0x3b   : > { %p1053_p10 = scmp.ne.s32.totalorder %s1050_s20, 0 }
  0x3c   : > { %p1054_p11 = scmp.ne.s32.totalorder (!%p1053_p10), %s1051_s21, 0 }
  0x3d   : > { %202 = sbr.rel (%p1053_p10) target bundleno = 387 (0x183), region = 36 }
  0x44   : > { %850 = dma.done.wait (%p1054_p11), [#allocation7], 16  }
  0x45   : > { %852 = vsyncadd (%p1054_p11), [#allocation7], 4294967280 }
  0x46   : > { %854 = dma.done.wait (%p1054_p11), [#allocation9], 16  }
  0x47   : > { %856 = vsyncadd (%p1054_p11), [#allocation9], 4294967280 }
  0x48   : > { %858 = dma.done.wait (%p1054_p11), [#allocation5], 4096  }
  0x49   : > { %860 = vsyncadd (%p1054_p11), [#allocation5], 4294963200 }
  0x4a   : > { %216 = sfence }
  0x4b   : > { %p228_p6 = scmp.eq.s32.totalorder %s867_s15, 0 }
  0x4c   : > { %v234_v0 = vld [vmem:[%s1044_s2] sm:$0xff] (%p228_p6)  ;;  %s236_s29 = sld [smem:[#allocation8]] (%p228_p6) }
  0x4d   : > { %233 = sbr.rel (!%p228_p6) target bundleno = 86 (0x56), region = 52  ;;  %235 = vst [vmem:[#allocation2] sm:$0xff] (%p228_p6), %v234_v0 }
  0x52   : > { %v237_v1 = vstv (%p228_p6), %s236_s29 }
  0x53   : > { %v238_v2 = vmul.f32 (%p228_p6), %v237_v1, %v234_v0 }
  0x55   : > { %239 = vst [vmem:[#allocation11] sm:$0xff] %v238_v2 }
  0x56 PF: > { %v704_v3 = vld [vmem:[#allocation10 + $0x4] ss:$8 sps:$4 sm:$0xff]   ;;  %v706_v4 = vld [vmem:[#allocation10] ss:$8 sps:$4 sm:$0xff]   ;;  %v707_v5 = vld [vmem:[#allocation10 + $0x14] ss:$8 sps:$4 sm:$0xff]  }
  0x57   : > { %448 = vmatprep.subr.bf16.mxu0 %v704_v3  ;;  %v709_v6 = vld [vmem:[#allocation10 + $0x10] ss:$8 sps:$4 sm:$0xff]   ;;  %v710_v7 = vld [vmem:[#allocation10 + $0x24] ss:$8 sps:$4 sm:$0xff]   ;;  %v712_v8 = vld [vmem:[#allocation10 + $0x20] ss:$8 sps:$4 sm:$0xff]  }
  0x58   : > { %449 = vmatpush1.bf16.msra.mxu0 %v706_v4  ;;  %v713_v9 = vld [vmem:[#allocation10 + $0x34] ss:$8 sps:$4 sm:$0xff]   ;;  %v715_v10 = vld [vmem:[#allocation10 + $0x30] ss:$8 sps:$4 sm:$0xff]   ;;  %v716_v11 = vld [vmem:[#allocation10 + $0x44] ss:$8 sps:$4 sm:$0xff]  }
  0x59   : > { %450 = vmatprep.subr.bf16.mxu0 %v707_v5  ;;  %v718_v12 = vld [vmem:[#allocation10 + $0x40] ss:$8 sps:$4 sm:$0xff]   ;;  %v719_v13 = vld [vmem:[#allocation10 + $0x54] ss:$8 sps:$4 sm:$0xff]   ;;  %v721_v14 = vld [vmem:[#allocation10 + $0x50] ss:$8 sps:$4 sm:$0xff]  }
  0x5a   : > { %v722_v15 = vld [vmem:[#allocation10 + $0x64] ss:$8 sps:$4 sm:$0xff]   ;;  %v249_v16 = vld [vmem:[#allocation2] sm:$0xff]  ;;  %v724_v18 = vld [vmem:[#allocation10 + $0x60] ss:$8 sps:$4 sm:$0xff]   ;;  %s499_s21 = sld [smem:[#allocation4 + %s867_s15]] }
  0x5b   : > { %v252_v17 = vcombine.high %v249_v16, %v249_v16  ;;  %v725_v19 = vld [vmem:[#allocation10 + $0x74] ss:$8 sps:$4 sm:$0xff]   ;;  %v727_v21 = vld [vmem:[#allocation10 + $0x70] ss:$8 sps:$4 sm:$0xff]   ;;  %v728_v22 = vld [vmem:[#allocation10 + $0x84] ss:$8 sps:$4 sm:$0xff]   ;;  %v254_v38 = vpack.c.bf16 %v249_v16, %v249_v16 }
  0x5c   : > { %451 = vmatpush1.bf16.msra.mxu0 %v709_v6  ;;  %v730_v23 = vld [vmem:[#allocation10 + $0x80] ss:$8 sps:$4 sm:$0xff]   ;;  %v731_v24 = vld [vmem:[#allocation10 + $0x94] ss:$8 sps:$4 sm:$0xff]   ;;  %v733_v25 = vld [vmem:[#allocation10 + $0x90] ss:$8 sps:$4 sm:$0xff]  }
  0x5d   : > { %452 = vmatprep.subr.bf16.mxu0 %v710_v7  ;;  %v255_v20 = vpack.c.bf16 %v252_v17, %v252_v17  ;;  %v734_v26 = vld [vmem:[#allocation10 + $0xa4] ss:$8 sps:$4 sm:$0xff]   ;;  %v736_v27 = vld [vmem:[#allocation10 + $0xa0] ss:$8 sps:$4 sm:$0xff]   ;;  %v737_v28 = vld [vmem:[#allocation10 + $0xb4] ss:$8 sps:$4 sm:$0xff]  }
  0x5e   : > { %v739_v29 = vld [vmem:[#allocation10 + $0xb0] ss:$8 sps:$4 sm:$0xff]   ;;  %v740_v30 = vld [vmem:[#allocation10 + $0xc4] ss:$8 sps:$4 sm:$0xff]   ;;  %v742_v31 = vld [vmem:[#allocation10 + $0xc0] ss:$8 sps:$4 sm:$0xff]  }
  0x5f   : > { %480 = vmatprep.mubr.bf16.mxu0 %v255_v20  ;;  %v743_v32 = vld [vmem:[#allocation10 + $0xd4] ss:$8 sps:$4 sm:$0xff]   ;;  %v745_v33 = vld [vmem:[#allocation10 + $0xd0] ss:$8 sps:$4 sm:$0xff]   ;;  %v746_v34 = vld [vmem:[#allocation10 + $0xe4] ss:$8 sps:$4 sm:$0xff]  }
  0x60   : > { %453 = vmatpush1.bf16.msra.mxu0 %v712_v8  ;;  %v748_v35 = vld [vmem:[#allocation10 + $0xe0] ss:$8 sps:$4 sm:$0xff]   ;;  %v749_v36 = vld [vmem:[#allocation10 + $0xf4] ss:$8 sps:$4 sm:$0xff]   ;;  %v751_v37 = vld [vmem:[#allocation10 + $0xf0] ss:$8 sps:$4 sm:$0xff]   ;;  %v501_v39 = vstv %s499_s21 }
  0x61   : > { %454 = vmatprep.subr.bf16.mxu0 %v713_v9  ;;  %s506_s30 = sadd.s32 1, %s867_s15  ;;  %v502_v41 = vmul.f32 %v501_v39, %v249_v16  ;;  %v505_v48 = vld [vmem:[#allocation11] sm:$0xff]  ;;  %s882_s6 = smov [#allocation11]  }
  0x62   : > { %s507_s5 = sld [smem:[#allocation8 + %s506_s30]]  ;;  %s519_s7 = sshll.u32 %s882_s6, 4  ;;  %s520_s7 = int_to_ptr.vmem [resolvable:$true] %s519_s7 }
  0x63   : > { %p1007_p8 = scmp.eq.s32.totalorder %s593_s18, 2  ;;  %s811_s15 = scalar_lea.vmem %s520_s7, 128 }
  0x64   : > { %455 = vmatpush1.bf16.msra.mxu0 %v715_v10  ;;  %p812_p3 = scmp.ne.s32.totalorder %s520_s7, %s811_s15  ;;  %p818_p13 = scmp.lt.s32.totalorder %s520_s7, %s520_s7 }
  0x65   : > { %456 = vmatprep.subr.bf16.mxu0 %v716_v11  ;;  %p819_p0 = scmp.lt.s32.totalorder %s811_s15, %s811_s15 }
  0x66   : > { %p813_p4 = pnand %p812_p3, %p1007_p8 }
  0x67   : > { %p820_p1 = por %p819_p0, %p818_p13 }
  0x68   : > { %457 = vmatpush1.bf16.msra.mxu0 %v718_v12  ;;  %v508_v45 = vstv %s507_s5  ;;  %p814_p12 = pneg %p813_p4 }
  0x69   : > { %458 = vmatprep.subr.bf16.mxu0 %v719_v13 }
  0x6a   : > { %p821_p2 = pnand %p820_p1, %p814_p12 }
  0x6c   : > { %459 = vmatpush1.bf16.msra.mxu0 %v721_v14 }
  0x6d   : > { %460 = vmatprep.subr.bf16.mxu0 %v722_v15 }
  0x70   : > { %461 = vmatpush1.bf16.msra.mxu0 %v724_v18 }
  0x71   : > { %462 = vmatprep.subr.bf16.mxu0 %v725_v19 }
  0x74   : > { %463 = vmatpush1.bf16.msra.mxu0 %v727_v21 }
  0x75   : > { %464 = vmatprep.subr.bf16.mxu0 %v728_v22 }
  0x78   : > { %465 = vmatpush1.bf16.msra.mxu0 %v730_v23 }
  0x79   : > { %466 = vmatprep.subr.bf16.mxu0 %v731_v24 }
  0x7c   : > { %467 = vmatpush1.bf16.msra.mxu0 %v733_v25 }
  0x7d   : > { %468 = vmatprep.subr.bf16.mxu0 %v734_v26 }
  0x80   : > { %469 = vmatpush1.bf16.msra.mxu0 %v736_v27 }
  0x81   : > { %470 = vmatprep.subr.bf16.mxu0 %v737_v28 }
  0x84   : > { %471 = vmatpush1.bf16.msra.mxu0 %v739_v29 }
  0x85   : > { %472 = vmatprep.subr.bf16.mxu0 %v740_v30 }
  0x88   : > { %473 = vmatpush1.bf16.msra.mxu0 %v742_v31 }
  0x89   : > { %474 = vmatprep.subr.bf16.mxu0 %v743_v32 }
  0x8c   : > { %475 = vmatpush1.bf16.msra.mxu0 %v745_v33 }
  0x8d   : > { %476 = vmatprep.subr.bf16.mxu0 %v746_v34 }
  0x90   : > { %477 = vmatpush1.bf16.msra.mxu0 %v748_v35 }
  0x91   : > { %478 = vmatprep.subr.bf16.mxu0 %v749_v36 }
  0x94   : > { %479 = vmatpush1.bf16.msra.mxu0 %v751_v37 }
  0x97   : > { %481 = vmatmul.mubr.bf16.vlgmr.msra.gmra.mrb[0].mxu0 %v254_v38 }
 0x16a   : > { %v482_v40 = vpop.f32.mrb[0].mxu0 }
 0x16b   : > { %v484_v42 = vpop.f32.mrb[1].mxu0 }
 0x16c   : > { %v491_v43 = vcombine.low %v482_v40, %v484_v42  ;;  %v486_v44 = vpop.f32.mrb[2].mxu0 }
 0x16d   : > { %v487_v46 = vpop.f32.mrb[3].mxu0 }
 0x16e   : > { %v503_v47 = vsub.f32 %v491_v43, %v502_v41 }
 0x170   : > { %504 = vst [vmem:[#allocation2] sm:$0xff] %v503_v47  ;;  %v509_v49 = vmul.f32 %v508_v45, %v503_v47 }
 0x172   : > { %v510_v50 = vadd.f32 %v509_v49, %v505_v48 }
 0x174   : > { %511 = vst [vmem:[#allocation11] sm:$0xff] %v510_v50 }
 0x175   : > { %824 = shalt.err (!%p821_p2)
}
 0x176   : > { %s825_s18 = scalar_lea.hbm %s1046_s4, 128 }
 0x177   : > { %p826_p5 = scmp.ne.s32.totalorder %s1046_s4, %s825_s18  ;;  %p831_p10 = scmp.lt.u32.totalorder %s825_s18, %s1046_s4 }
 0x179   : > { %p827_p7 = pnand %p826_p5, %p1007_p8 }
 0x17b   : > { %p828_p9 = pneg %p827_p7 }
 0x17d   : > { %p833_p11 = pnand %p831_p10, %p828_p9 }
 0x17f   : > { %836 = shalt.err (!%p833_p11)
}
 0x180   : > { %653 = dma.vmem_to_hbm [thread:$0]  (%p1007_p8), %s520_s7, 128, %s1046_s4, [#allocation6]  }
 0x181   : > { %862 = dma.done.wait (%p1007_p8), [#allocation6], 128  }
 0x182   : > { %864 = vsyncadd (%p1007_p8), [#allocation6], 4294967168 }
 0x183 PF: > { %s18_s17 = sadd.s32 1, %s875_s17   ;;  %s1056_s15 = smov %s871_s16 }
 0x184   : > { %p15_p6 = scmp.ge.s32.totalorder %s18_s17, 5   ;;  %s1057_s16 = smov %s1059_s19 }
 0x186   :  { %17 = sbr.rel (!%p15_p6) target bundleno = 5 (0x5), region = 88 }
 0x18d   :  { %532 = vsyncpa [#allocation5], 1 }
 0x18e   :  { %534 = vsyncpa [#allocation5 + $0x1], 1 }
 0x18f   :  { %535 = vsyncpa [#allocation6], 1 }
 0x190   :  { %537 = vsyncpa [#allocation6 + $0x1], 1 }
 0x191   :  { %538 = vsyncpa [#allocation7], 1 }
 0x192   :  { %540 = vsyncpa [#allocation7 + $0x1], 1 }
 0x193   :  { %541 = vsyncpa [#allocation9], 1 }

</bundles_post_ra>
